<compile_context>
chip_gen: v6e
topology: v6e:2x2x1
jax: 0.10.0
libtpu: 0.0.40
codegen_flags: <defaults>
</compile_context>

<pallas_src>
import jax
import jax.numpy as jnp
from jax import lax
from jax.experimental import pallas as pl
from jax.experimental.pallas import tpu as pltpu


def _round_up(x: int, m: int) -> int:
    return -(-x // m) * m


def _center_embed_kernel(ids_ref, aux_ref, ew_ref, aw_ref, b_ref, o_ref):
    """Fused gather + dense + tanh + window-mean + strand-average.

    ids_ref: (B_blk*2W, 1) int32   [fwd window ++ rev window] token ids
    aux_ref: (B_blk*2W, A)         window aux features (bf16 or f32)
    ew_ref:  (V_pad, H)            embed_tbl @ w   (folded dense weight)
    aw_ref:  (A, H)                w_aux @ w       (folded aux weight)
    b_ref:   (1, H) f32            dense bias
    o_ref:   (B_blk, H) f32        ((mean fwd window) + (mean rev window)) / 2
    """
    m = ids_ref.shape[0]
    v_pad = ew_ref.shape[0]
    b_blk, h_dim = o_ref.shape
    two_w = m // b_blk

    # Embedding-row gather as a one-hot MXU matmul (exact: each row of
    # `onehot` has a single 1).  Keeps the gather on the MXU with no HBM
    # round-trip; the vocab is tiny so the extra flops are negligible.
    eq = ids_ref[...] == lax.broadcasted_iota(jnp.int32, (m, v_pad), 1)
    onehot = jnp.where(eq, jnp.ones((), ew_ref.dtype),
                       jnp.zeros((), ew_ref.dtype))            # (m, V_pad)

    logits = jnp.dot(onehot, ew_ref[...], preferred_element_type=jnp.float32)
    logits = logits + jnp.dot(aux_ref[...], aw_ref[...],
                              preferred_element_type=jnp.float32)
    h_act = jnp.tanh(logits + b_ref[...])                      # (m, H) f32

    # Rows are [fwd window ++ rev window] per batch element, so the mean over
    # 2W rows equals ((mean fwd window) + (mean rev window)) / 2 exactly.
    h3 = h_act.reshape(b_blk, two_w, h_dim)   # free when 2W%8==0 and H%128==0
    o_ref[...] = (jnp.sum(h3, axis=1) * (1.0 / two_w)).astype(o_ref.dtype)


def _choose_batch_block(batch, two_w, a_dim, h_dim, v_pad, block_budget):
    """Largest batch block (multiple of 8) whose per-step VMEM footprint fits
    `block_budget`, plus the padded batch size (>= 2 grid steps)."""
    lane = 128
    h_l = _round_up(max(h_dim, 1), lane)
    a_l = _round_up(max(a_dim, 1), lane)
    v_l = _round_up(max(v_pad, 1), lane)
    per_b = (2 * two_w * lane * 4      # ids block  (2W,1) i32, double-buffered
             + 2 * two_w * a_l * 2     # aux block  (2W,A) bf16, double-buffered
             + 2 * h_l * 4             # out block  (1,H)  f32,  double-buffered
             + two_w * v_l * 2         # one-hot temporary
             + 2 * two_w * h_l * 4)    # logits / tanh temporaries
    cap = max(8, (block_budget // per_b) // 8 * 8)
    b_blk = min(cap, max(8, _round_up(-(-batch // 2), 8)))
    b_pad = max(_round_up(batch, b_blk), 2 * b_blk)
    return b_blk, b_pad


def model_center_embedding(input_ids_fwd, input_ids_rev,
                           aux_features_fwd, aux_features_rev,
                           params, center_window_size,
                           *, compute_dtype=jnp.bfloat16):
    """JAX wrapper reproducing ModelCenterEmbedding.forward."""
    hp = lax.Precision.HIGHEST
    embed = params["embed"].astype(jnp.float32)            # (V, E)
    w = params["w"].astype(jnp.float32)                    # (E, H)
    b = params["b"].astype(jnp.float32).reshape(1, -1)     # (1, H)
    w_aux = params.get("w_aux")                            # (A, E) or None

    V = embed.shape[0]
    H = w.shape[1]
    B = input_ids_fwd.shape[0]
    W = 2 * (center_window_size // 2)                      # true slice length
    two_w = 2 * W

    def _window(x):
        c = x.shape[1] // 2
        lo = c - center_window_size // 2
        return x[:, lo:lo + W]

    # ---- exact linear fold (the dense layer is linear in its input) ----
    #   tanh((embed[ids] + aux @ w_aux) @ w + b)
    #     == tanh(onehot(ids) @ (embed @ w) + aux @ (w_aux @ w) + b)
    embed_w = jnp.dot(embed, w, precision=hp)              # (V, H)
    if w_aux is not None and aux_features_fwd is not None:
        A = w_aux.shape[0]
        waux_w = jnp.dot(w_aux.astype(jnp.float32), w, precision=hp)  # (A, H)
        aux_win = jnp.concatenate(
            [_window(aux_features_fwd), _window(aux_features_rev)], axis=1)
    else:
        A = 8
        waux_w = jnp.zeros((A, H), jnp.float32)
        aux_win = jnp.zeros((B, two_w, A), jnp.float32)

    ids_win = jnp.concatenate(
        [_window(input_ids_fwd), _window(input_ids_rev)], axis=1
    ).astype(jnp.int32)                                     # (B, 2W)

    # ---- VMEM-budgeted batch blocking (v7x has half the VMEM of v6e) ----
    v_pad = _round_up(V, 8)
    try:
        phys_vmem = int(pltpu.get_tpu_info().vmem_capacity_bytes)
    except Exception:
        phys_vmem = 64 * 1024 * 1024                        # v7x per-TC floor
    vmem_limit = min(phys_vmem // 2, 64 * 1024 * 1024)
    b_blk, b_pad = _choose_batch_block(B, two_w, A, H, v_pad, vmem_limit // 2)

    if b_pad > B:
        ids_win = jnp.pad(ids_win, ((0, b_pad - B), (0, 0)))
        aux_win = jnp.pad(aux_win, ((0, b_pad - B), (0, 0), (0, 0)))

    # Pre-flatten in the wrapper (free in XLA) so the kernel uses 2-D blocks
    # and never reshapes its inputs.
    ids_flat = ids_win.reshape(b_pad * two_w, 1)
    aux_flat = aux_win.reshape(b_pad * two_w, A).astype(compute_dtype)
    embed_w_p = jnp.zeros((v_pad, H), jnp.float32).at[:V].set(embed_w)
    embed_w_p = embed_w_p.astype(compute_dtype)
    waux_w_c = waux_w.astype(compute_dtype)

    out = pl.pallas_call(
        _center_embed_kernel,
        out_shape=jax.ShapeDtypeStruct((b_pad, H), jnp.float32),
        grid=(b_pad // b_blk,),
        in_specs=[
            pl.BlockSpec((b_blk * two_w, 1), lambda i: (i, 0)),
            pl.BlockSpec((b_blk * two_w, A), lambda i: (i, 0)),
            pl.BlockSpec((v_pad, H), lambda i: (0, 0)),
            pl.BlockSpec((A, H), lambda i: (0, 0)),
            pl.BlockSpec((1, H), lambda i: (0, 0)),
        ],
        out_specs=pl.BlockSpec((b_blk, H), lambda i: (i, 0)),
        compiler_params=pltpu.CompilerParams(
            dimension_semantics=("parallel",),
            vmem_limit_bytes=int(vmem_limit)),
    )(ids_flat, aux_flat, embed_w_p, waux_w_c, b)
    return out[:B]


def _reference(input_ids_fwd, input_ids_rev, aux_fwd, aux_rev,
               params, center_window_size):
    """Pure-JAX reference: full-length encoder, slice hidden states, mean."""
    hp = lax.Precision.HIGHEST

    def get_center_embedding(ids, aux):
        x = jnp.take(params["embed"], ids, axis=0)
        if aux is not None:
            x = x + jnp.einsum("bla,ae->ble", aux, params["w_aux"],
                               precision=hp)
        h = jnp.tanh(jnp.einsum("ble,eh->blh", x.astype(jnp.float32),
                                params["w"], precision=hp) + params["b"])
        L = h.shape[1]
        center = L // 2
        left = center - center_window_size // 2
        right = center + center_window_size // 2
        return h[:, left:right].mean(axis=1)

    ef = get_center_embedding(input_ids_fwd, aux_fwd)
    er = get_center_embedding(input_ids_rev, aux_rev)
    return (ef + er) / 2


if __name__ == "__main__":
    # Small shapes; H chosen lane-dense (multiple of 128) per the perf review.
    B, L, V, E, H, A = 2, 16, 11, 32, 128, 2
    center_window_size = 8

    key = jax.random.PRNGKey(0)
    (k_ids_f, k_ids_r, k_aux_f, k_aux_r,
     k_emb, k_waux, k_w, k_b) = jax.random.split(key, 8)

    input_ids_fwd = jax.random.randint(k_ids_f, (B, L), 0, V, dtype=jnp.int32)
    input_ids_rev = jax.random.randint(k_ids_r, (B, L), 0, V, dtype=jnp.int32)
    aux_features_fwd = jax.random.normal(k_aux_f, (B, L, A), jnp.float32)
    aux_features_rev = jax.random.normal(k_aux_r, (B, L, A), jnp.float32)

    params = {
        "embed": 0.1 * jax.random.normal(k_emb, (V, E), jnp.float32),
        "w_aux": 0.1 * jax.random.normal(k_waux, (A, E), jnp.float32),
        "w": 0.1 * jax.random.normal(k_w, (E, H), jnp.float32),
        "b": 0.1 * jax.random.normal(k_b, (1, H), jnp.float32),
    }

    # f32 run validates the exact linear fold; bf16 run is the fast path.
    out_f32 = model_center_embedding(
        input_ids_fwd, input_ids_rev, aux_features_fwd, aux_features_rev,
        params, center_window_size, compute_dtype=jnp.float32)
    out_bf16 = model_center_embedding(
        input_ids_fwd, input_ids_rev, aux_features_fwd, aux_features_rev,
        params, center_window_size, compute_dtype=jnp.bfloat16)
    jax.block_until_ready((out_f32, out_bf16))

    ref = _reference(input_ids_fwd, input_ids_rev,
                     aux_features_fwd, aux_features_rev,
                     params, center_window_size)
    assert out_f32.shape == (B, H) and out_bf16.shape == (B, H)
    assert jnp.allclose(out_f32, ref, atol=1e-4, rtol=1e-4)
    assert jnp.allclose(out_bf16, ref, atol=3e-2, rtol=3e-2)

    print("KERNEL_OK")
</pallas_src>

<mosaic_0001>
module attributes {stable_mosaic.version = 11 : i64} {
  func.func @_center_embed_kernel(%arg0: i32, %arg1: memref<128x1xi32, #tpu.memory_space<vmem>>, %arg2: memref<128x2xf32, #tpu.memory_space<vmem>>, %arg3: memref<16x128xf32, #tpu.memory_space<vmem>>, %arg4: memref<2x128xf32, #tpu.memory_space<vmem>>, %arg5: memref<1x128xf32, #tpu.memory_space<vmem>>, %arg6: memref<8x128xf32, #tpu.memory_space<vmem>>) attributes {dimension_semantics = [#tpu.dimension_semantics<parallel>], iteration_bounds = array<i64: 2>, scalar_prefetch = 0 : i64, scratch_operands = 0 : i64, tpu.core_type = #tpu.core_type<tc>, window_params = [{transform_indices = @transform_0, window_bounds = array<i64: 128, 1>}, {transform_indices = @transform_1, window_bounds = array<i64: 128, 2>}, {pipeline_mode = #tpu.pipeline_mode<synchronous>, transform_indices = @transform_2, window_bounds = array<i64: 16, 128>}, {pipeline_mode = #tpu.pipeline_mode<synchronous>, transform_indices = @transform_3, window_bounds = array<i64: 2, 128>}, {pipeline_mode = #tpu.pipeline_mode<synchronous>, transform_indices = @transform_4, window_bounds = array<i64: 1, 128>}, {transform_indices = @transform_5, window_bounds = array<i64: 8, 128>}]} {
    %c0 = arith.constant 0 : index
    %c0_0 = arith.constant 0 : index
    %0 = vector.load %arg1[%c0, %c0_0] : memref<128x1xi32, #tpu.memory_space<vmem>>, vector<128x1xi32>
    %1 = tpu.iota {dimensions = array<i32: 1>} : vector<128x16xi32>
    %2 = vector.broadcast %0 : vector<128x1xi32> to vector<128x16xi32>
    %3 = arith.cmpi eq, %2, %1 : vector<128x16xi32>
    %cst = arith.constant 1.000000e+00 : f32
    %cst_1 = arith.constant 0.000000e+00 : f32
    %4 = vector.broadcast %cst : f32 to vector<128x16xf32>
    %5 = vector.broadcast %cst_1 : f32 to vector<128x16xf32>
    %6 = arith.select %3, %4, %5 : vector<128x16xi1>, vector<128x16xf32>
    %c0_2 = arith.constant 0 : index
    %c0_3 = arith.constant 0 : index
    %7 = vector.load %arg3[%c0_2, %c0_3] : memref<16x128xf32, #tpu.memory_space<vmem>>, vector<16x128xf32>
    %cst_4 = arith.constant dense<0.000000e+00> : vector<128x128xf32>
    %8 = tpu.matmul %6, %7, %cst_4 {dimension_numbers = #tpu.dot_dimension_numbers<[1], [0], [0], [1], [0, 0, 1, 1], [], []>} : vector<128x16xf32>, vector<16x128xf32>, vector<128x128xf32> -> vector<128x128xf32>
    %c0_5 = arith.constant 0 : index
    %c0_6 = arith.constant 0 : index
    %9 = vector.load %arg2[%c0_5, %c0_6] : memref<128x2xf32, #tpu.memory_space<vmem>>, vector<128x2xf32>
    %c0_7 = arith.constant 0 : index
    %c0_8 = arith.constant 0 : index
    %10 = vector.load %arg4[%c0_7, %c0_8] : memref<2x128xf32, #tpu.memory_space<vmem>>, vector<2x128xf32>
    %cst_9 = arith.constant dense<0.000000e+00> : vector<128x128xf32>
    %11 = tpu.matmul %9, %10, %cst_9 {dimension_numbers = #tpu.dot_dimension_numbers<[1], [0], [0], [1], [0, 0, 1, 1], [], []>} : vector<128x2xf32>, vector<2x128xf32>, vector<128x128xf32> -> vector<128x128xf32>
    %12 = arith.addf %8, %11 : vector<128x128xf32>
    %c0_10 = arith.constant 0 : index
    %c0_11 = arith.constant 0 : index
    %13 = vector.load %arg5[%c0_10, %c0_11] : memref<1x128xf32, #tpu.memory_space<vmem>>, vector<1x128xf32>
    %14 = vector.broadcast %13 : vector<1x128xf32> to vector<128x128xf32>
    %15 = arith.addf %12, %14 : vector<128x128xf32>
    %16 = math.tanh %15 : vector<128x128xf32>
    %17 = vector.shape_cast %16 : vector<128x128xf32> to vector<8x16x128xf32>
    %cst_12 = arith.constant dense<0.000000e+00> : vector<8x128xf32>
    %18 = vector.multi_reduction <add>, %17, %cst_12 [1] : vector<8x16x128xf32> to vector<8x128xf32>
    %cst_13 = arith.constant 6.250000e-02 : f32
    %19 = vector.broadcast %cst_13 : f32 to vector<8x128xf32>
    %20 = arith.mulf %18, %19 : vector<8x128xf32>
    %c0_14 = arith.constant 0 : index
    %c0_15 = arith.constant 0 : index
    %21 = vector.load %arg6[%c0_14, %c0_15] : memref<8x128xf32, #tpu.memory_space<vmem>>, vector<8x128xf32>
    tpu.vector_store %arg6[%c0_14, %c0_15], %20 {strides = array<i32>} : memref<8x128xf32, #tpu.memory_space<vmem>>, vector<8x128xf32>,
    return
  }
  func.func @transform_0(%arg0: i32) -> (i32, i32) {
    %c0_i32 = arith.constant 0 : i32
    %c0_i32_0 = arith.constant 0 : i32
    return %arg0, %c0_i32 : i32, i32
  }
  func.func @transform_1(%arg0: i32) -> (i32, i32) {
    %c0_i32 = arith.constant 0 : i32
    %c0_i32_0 = arith.constant 0 : i32
    return %arg0, %c0_i32 : i32, i32
  }
  func.func @transform_2(%arg0: i32) -> (i32, i32) {
    %c0_i32 = arith.constant 0 : i32
    %c0_i32_0 = arith.constant 0 : i32
    %c0_i32_1 = arith.constant 0 : i32
    return %c0_i32, %c0_i32_0 : i32, i32
  }
  func.func @transform_3(%arg0: i32) -> (i32, i32) {
    %c0_i32 = arith.constant 0 : i32
    %c0_i32_0 = arith.constant 0 : i32
    %c0_i32_1 = arith.constant 0 : i32
    return %c0_i32, %c0_i32_0 : i32, i32
  }
  func.func @transform_4(%arg0: i32) -> (i32, i32) {
    %c0_i32 = arith.constant 0 : i32
    %c0_i32_0 = arith.constant 0 : i32
    %c0_i32_1 = arith.constant 0 : i32
    return %c0_i32, %c0_i32_0 : i32, i32
  }
  func.func @transform_5(%arg0: i32) -> (i32, i32) {
    %c0_i32 = arith.constant 0 : i32
    %c0_i32_0 = arith.constant 0 : i32
    return %arg0, %c0_i32 : i32, i32
  }
}

</mosaic_0001>

<bundles_post_ra>
// kernel: tpu_custom_call.1
= control target key start
LH: loop header
LB: loop body
LE: loop exit
PB: predicated region body
PF: predicated region fallthrough
CT: control target
= control target key end

     0   :  { %10 = vsyncpa [#allocation3], 0  ;;  %s1492_s0 = inlined_call_operand.vmem [shape: s32[256,1], index: 0, kind: input, shape index: {}]   ;;  %s1493_s1 = inlined_call_operand.vmem [shape: f32[256,2], index: 1, kind: input, shape index: {}]   ;;  %s1494_s2 = inlined_call_operand.vmem [shape: f32[16,128], index: 2, kind: input, shape index: {}]   ;;  %s1495_s3 = inlined_call_operand.vmem [shape: f32[2,128], index: 3, kind: input, shape index: {}]   ;;  %s1496_s4 = inlined_call_operand.vmem [shape: f32[1,128], index: 4, kind: input, shape index: {}]   ;;  %s1497_s5 = inlined_call_operand.hbm [shape: f32[16,128], index: 5, kind: output, shape index: {}]  }
   0x1   :  { %12 = vsyncpa [#allocation3 + $0x1], 0  ;;  %s1274_s18 = smov 0   ;;  %s1276_s19 = smov 0  }
   0x2   :  { %s1278_s20 = smov 0   ;;  %s1280_s21 = smov 0  }
   0x3 LB: > { %s1295_s22 = sadd.s32 4294967295, %s1239_s21   ;;  %s968_s23 = sadd.s32 4294967294, %s1239_s21   ;;  %s1239_s21 = sphi %s1280_s21, %s1503_s21   ;;  %s1235_s20 = sphi %s1278_s20, %s1502_s20   ;;  %s1231_s19 = sphi %s1276_s19, %s1501_s19   ;;  %s1227_s18 = sphi %s1274_s18, %s1500_s18  }
   0x4   : > { %s1299_s24 = sadd.s32 1, %s1239_s21   ;;  %s140_s25 = sadd.s32 1, %s1235_s20 }
   0x5   : > { %s137_s26 = ssub.s32 %s1239_s21, %s1299_s24  ;;  %p150_p0 = scmp.ne.s32.totalorder %s1235_s20, %s1231_s19 }
   0x6   : > { %p138_p1 = scmp.eq.s32.totalorder %s137_s26, 0  ;;  %p151_p2 = scmp.eq.s32.totalorder %s1295_s22, 1 }
   0x7   : > { %p156_p3 = scmp.ne.s32.totalorder %s1231_s19, %s1227_s18  ;;  %p157_p4 = scmp.eq.s32.totalorder %s968_s23, 1 }
   0x8   : > { %s1310_s27 = scalar_select %p138_p1, %s1235_s20, %s140_s25  }
   0x9   : > { %p1312_p5 = por %p151_p2, %p150_p0  ;;  %p1316_p6 = por %p157_p4, %p156_p3 }
   0xa   : > { %p971_p7 = scmp.ge.s32.totalorder %s1239_s21, 1  ;;  %p202_p8 = scmp.lt.s32.totalorder %s1239_s21, 3 }
   0xc   : > { %p203_p9 = pnand %p971_p7, %p202_p8 }
   0xd   : > { %s973_s30 = sshll.u32 (!%p203_p9), %s1295_s22, 4  ;;  %s1012_s7 = sshll.u32 (!%p203_p9), %s1295_s22, 7 }
   0xe   : > { %206 = sbr.rel (%p203_p9) target bundleno = 424 (0x1a8), region = 40  ;;  %p236_p10 = scmp.lt.s32.totalorder (!%p203_p9), %s973_s30, 31 }
   0xf   : > { %s1455_s12 = scalar_lea.hbm (!%p203_p9), %s1497_s5, %s1012_s7  ;;  %s1243_s22 = smov (!%p203_p9), [#allocation2]  }
  0x10   : > { %s1183_s15 = sshll.u32 (!%p203_p9), %s1243_s22, 4  ;;  %s1184_s15 = int_to_ptr.vmem [resolvable:$false] %s1183_s15 }
  0x13   : > { %v1241_v0 = vmov 0   ;;  %s1505_s30 = smov (!%p236_p10, %s973_s30), 31  ;;  %v363_v1 = vld [vmem:[%s1495_s3] sm:$0x3]  ;;  %vm413_vm0 = vcmask 1041408   ;;  %v346_v2 = vld [vmem:[%s1494_s2 + $0x8] sm:$0xff]  ;;  %v263_v36 = vlaneseq }
  0x14   : > { %1146 = vset.pattern.permute.xlu1 %v1241_v0  ;;  %1145 = vset.pattern.permute.xlu0 %v1241_v0  ;;  %s974_s6 = sshll.u32 %s1505_s30, 3  ;;  %vm364_vm1 = vcmask 15360   ;;  %v345_v11 = vld [vmem:[%s1494_s2] sm:$0xff]  ;;  %vm562_vm2 = vcmask 130048   ;;  %v1242_v40 = vmov 0.0   ;;  %s232_s30 = sand.u32 1, %s1231_s19  }
  0x15   : > { %s1332_s13 = scalar_lea.vmem %s1492_s0, %s974_s6  ;;  %1050 = vmatprep.subr.msk.mxu0 %vm413_vm0, %v363_v1  ;;  %1076 = vmatprep.subr.mxu1 %v346_v2  ;;  %s1341_s16 = scalar_lea.vmem %s1493_s1, %s974_s6  ;;  %v1390_v37 = vand.u32 127, %v263_v36 }
  0x16   : > { %v249_v3 = vld [vmem:[%s1332_s13 + $0x10] sm:$0xff]  ;;  %v247_v4 = vld [vmem:[%s1332_s13] sm:$0xff]  ;;  %1051 = vmatpush3.msk.msra.mxu0 %vm413_vm0, %v363_v1  ;;  %1077 = vmatpush3.msra.mxu1 %v346_v2  ;;  %v250_v5 = vld [vmem:[%s1332_s13 + $0x18] sm:$0xff]  ;;  %s1448_s6 = sshll.u32 %s232_s30, 3 }
  0x17   : > { %272 = vperm.xlu1 %1146, %v249_v3   ;;  %266 = vperm.xlu0 %1145, %v247_v4   ;;  %v248_v6 = vld [vmem:[%s1332_s13 + $0x8] sm:$0xff]  ;;  %v347_v8 = vld [vmem:[%s1341_s16] sm:$0xff]  ;;  %v349_v12 = vld [vmem:[%s1341_s16 + $0x10] sm:$0xff]  ;;  %s234_s8 = scalar_lea.vmem [#allocation2], %s1448_s6 }
  0x18   : > { %v252_v7 = vld [vmem:[%s1332_s13 + $0x28] sm:$0xff]  ;;  %v251_v10 = vld [vmem:[%s1332_s13 + $0x20] sm:$0xff]  ;;  %1052 = vmatprep.mubr.msk.f32.mxu0 %vm364_vm1, %v347_v8  ;;  %1078 = vmatprep.subr.mxu1 %v345_v11  ;;  %v350_v13 = vld [vmem:[%s1341_s16 + $0x18] sm:$0xff]  ;;  %s897_s9 = sshll.u32 %s234_s8, 4  ;;  %s898_s9 = int_to_ptr.vmem [resolvable:$true] %s897_s9 }
  0x19   : > { %v348_v9 = vld [vmem:[%s1341_s16 + $0x8] sm:$0xff]  ;;  %1079 = vmatpush3.msra.mxu1 %v345_v11  ;;  %v351_v14 = vld [vmem:[%s1341_s16 + $0x20] sm:$0xff]  ;;  %v254_v15 = vld [vmem:[%s1332_s13 + $0x38] sm:$0xff]  ;;  %s1179_s14 = scalar_lea.vmem %s898_s9, 128  ;;  %p1186_p0 = scmp.lt.s32.totalorder %s898_s9, %s1184_s15 }
  0x1a   : > { %1053 = vmatmul.mubr.msk.f32.vlgmr.msra.gmra.mxu0 %vm364_vm1, %v348_v9  ;;  %v253_v16 = vld [vmem:[%s1332_s13 + $0x30] sm:$0xff]  ;;  %v352_v17 = vld [vmem:[%s1341_s16 + $0x28] sm:$0xff]  ;;  %v255_v20 = vld [vmem:[%s1332_s13 + $0x40] sm:$0xff]  ;;  %p1180_p11 = scmp.ne.s32.totalorder %s898_s9, %s1179_s14 }
  0x1b   : > { %275 = vperm.xlu1 %1146, %v250_v5   ;;  %269 = vperm.xlu0 %1145, %v248_v6   ;;  %v353_v18 = vld [vmem:[%s1341_s16 + $0x30] sm:$0xff]  ;;  %v256_v19 = vld [vmem:[%s1332_s13 + $0x48] sm:$0xff]  ;;  %v354_v21 = vld [vmem:[%s1341_s16 + $0x38] sm:$0xff] }
  0x1c   : > { %1055 = vmatprep.mubr.msk.f32.mxu0 %vm364_vm1, %v349_v12  ;;  %v355_v22 = vld [vmem:[%s1341_s16 + $0x40] sm:$0xff]  ;;  %v258_v23 = vld [vmem:[%s1332_s13 + $0x58] sm:$0xff]  ;;  %v257_v24 = vld [vmem:[%s1332_s13 + $0x50] sm:$0xff]  ;;  %p1181_p12 = pnand %p1180_p11, %p1312_p5 }
  0x1d   : > { %v356_v25 = vld [vmem:[%s1341_s16 + $0x48] sm:$0xff]  ;;  %v357_v26 = vld [vmem:[%s1341_s16 + $0x50] sm:$0xff]  ;;  %v259_v28 = vld [vmem:[%s1332_s13 + $0x60] sm:$0xff] }
  0x1e   : > { %1056 = vmatmul.mubr.msk.f32.gmra.mxu0 %vm364_vm1, %v350_v13  ;;  %v260_v27 = vld [vmem:[%s1332_s13 + $0x68] sm:$0xff]  ;;  %v358_v29 = vld [vmem:[%s1341_s16 + $0x58] sm:$0xff]  ;;  %v359_v30 = vld [vmem:[%s1341_s16 + $0x60] sm:$0xff]  ;;  %p1182_p13 = pneg %p1181_p12 }
  0x1f   : > { %281 = vperm.xlu1 %1146, %v252_v7   ;;  %278 = vperm.xlu0 %1145, %v251_v10   ;;  %v262_v31 = vld [vmem:[%s1332_s13 + $0x78] sm:$0xff]  ;;  %v261_v32 = vld [vmem:[%s1332_s13 + $0x70] sm:$0xff]  ;;  %v360_v33 = vld [vmem:[%s1341_s16 + $0x68] sm:$0xff]  ;;  %s884_s13 = scalar_lea.sflag [#allocation3], %s232_s30 }
  0x20   : > { %1058 = vmatprep.mubr.msk.f32.mxu0 %vm364_vm1, %v351_v14  ;;  %v361_v34 = vld [vmem:[%s1341_s16 + $0x70] sm:$0xff]  ;;  %v362_v35 = vld [vmem:[%s1341_s16 + $0x78] sm:$0xff]  ;;  %s1185_s16 = scalar_lea.vmem %s1184_s15, 256 }
  0x21   : > { %p1187_p1 = scmp.lt.s32.totalorder %s1185_s16, %s1179_s14 }
  0x22   : > { %1059 = vmatmul.mubr.msk.f32.gmra.mxu0 %vm364_vm1, %v352_v17 }
  0x23   : > { %287 = vperm.xlu1 %1146, %v254_v15   ;;  %284 = vperm.xlu0 %1145, %v253_v16   ;;  %p1188_p2 = por %p1187_p1, %p1186_p0 }
  0x24   : > { %1061 = vmatprep.mubr.msk.f32.mxu0 %vm364_vm1, %v353_v18 }
  0x25   : > { %p1189_p3 = pnand %p1188_p2, %p1182_p13 }
  0x26   : > { %1062 = vmatmul.mubr.msk.f32.gmra.mxu0 %vm364_vm1, %v354_v21  ;;  %v1427_v21 = vld [vmem:[%s1496_s4] ss:$0 sm:$0xff] }
  0x27   : > { %293 = vperm.xlu1 %1146, %v256_v19   ;;  %290 = vperm.xlu0 %1145, %v255_v20  }
  0x28   : > { %1064 = vmatprep.mubr.msk.f32.mxu0 %vm364_vm1, %v355_v22 }
  0x2a   : > { %1065 = vmatmul.mubr.msk.f32.gmra.mxu0 %vm364_vm1, %v356_v25 }
  0x2b   : > { %299 = vperm.xlu1 %1146, %v258_v23   ;;  %296 = vperm.xlu0 %1145, %v257_v24  }
  0x2c   : > { %1067 = vmatprep.mubr.msk.f32.mxu0 %vm364_vm1, %v357_v26 }
  0x2e   : > { %1068 = vmatmul.mubr.msk.f32.gmra.mxu0 %vm364_vm1, %v358_v29 }
  0x2f   : > { %305 = vperm.xlu1 %1146, %v260_v27   ;;  %302 = vperm.xlu0 %1145, %v259_v28  }
  0x30   : > { %1070 = vmatprep.mubr.msk.f32.mxu0 %vm364_vm1, %v359_v30 }
  0x32   : > { %1071 = vmatmul.mubr.msk.f32.gmra.mxu0 %vm364_vm1, %v360_v33 }
  0x33   : > { %311 = vperm.xlu1 %1146, %v262_v31   ;;  %308 = vperm.xlu0 %1145, %v261_v32  }
  0x34   : > { %1073 = vmatprep.mubr.msk.f32.mxu0 %vm364_vm1, %v361_v34 }
  0x36   : > { %1074 = vmatmul.mubr.msk.f32.gmra.mxu0 %vm364_vm1, %v362_v35 }
  0x92   : > { %v273_v38 = vpop.permute.xlu1 %272  ;;  %v267_v39 = vpop.permute.xlu0 %266 }
  0x93   : > { %vm313_vm3 = vcmp.eq.s32.totalorder %v267_v39, %v1390_v37  ;;  %vm315_vm4 = vcmp.eq.s32.totalorder %v273_v38, %v1390_v37 }
  0x94   : > { %v329_v41 = vsel %vm313_vm3, 1.0, %v1242_v40  ;;  %v331_v44 = vsel %vm315_vm4, 1.0, %v1242_v40  ;;  %vm869_vm4 = vcmask 1042434  }
  0x95   : > { %1080 = vmatprep.mubr.msk.f32.mxu1 %vm562_vm2, %v329_v41 }
  0x96   : > { %v276_v42 = vpop.permute.xlu1 %275  ;;  %v270_v43 = vpop.permute.xlu0 %269 }
  0x97   : > { %vm314_vm5 = vcmp.eq.s32.totalorder %v270_v43, %v1390_v37  ;;  %vm316_vm6 = vcmp.eq.s32.totalorder %v276_v42, %v1390_v37 }
  0x98   : > { %v330_v45 = vsel %vm314_vm5, 1.0, %v1242_v40  ;;  %v332_v48 = vsel %vm316_vm6, 1.0, %v1242_v40  ;;  %vm871_vm5 = vcmask 1043459   ;;  %vm873_vm6 = vcmask 1044484  }
  0x99   : > { %1081 = vmatmul.mubr.msk.f32.vlgmr.msra.gmra.mxu1 %vm562_vm2, %v330_v45 }
  0x9a   : > { %v282_v46 = vpop.permute.xlu1 %281  ;;  %1083 = vmatprep.mubr.msk.f32.mxu1 %vm562_vm2, %v331_v44  ;;  %v279_v47 = vpop.permute.xlu0 %278 }
  0x9b   : > { %vm317_vm7 = vcmp.eq.s32.totalorder %v279_v47, %v1390_v37  ;;  %vm318_vm8 = vcmp.eq.s32.totalorder %v282_v46, %v1390_v37 }
  0x9c   : > { %v333_v49 = vsel %vm317_vm7, 1.0, %v1242_v40  ;;  %v334_v52 = vsel %vm318_vm8, 1.0, %v1242_v40  ;;  %vm875_vm7 = vcmask 1045509   ;;  %vm877_vm8 = vcmask 1046534  }
  0x9d   : > { %1084 = vmatmul.mubr.msk.f32.gmra.mxu1 %vm562_vm2, %v332_v48 }
  0x9e   : > { %v288_v50 = vpop.permute.xlu1 %287  ;;  %1086 = vmatprep.mubr.msk.f32.mxu1 %vm562_vm2, %v333_v49  ;;  %v285_v51 = vpop.permute.xlu0 %284 }
  0x9f   : > { %vm319_vm9 = vcmp.eq.s32.totalorder %v285_v51, %v1390_v37  ;;  %vm320_vm10 = vcmp.eq.s32.totalorder %v288_v50, %v1390_v37 }
  0xa0   : > { %v335_v53 = vsel %vm319_vm9, 1.0, %v1242_v40  ;;  %v336_v56 = vsel %vm320_vm10, 1.0, %v1242_v40  ;;  %vm879_vm9 = vcmask 1047559  }
  0xa1   : > { %1087 = vmatmul.mubr.msk.f32.gmra.mxu1 %vm562_vm2, %v334_v52 }
  0xa2   : > { %v294_v54 = vpop.permute.xlu1 %293  ;;  %1089 = vmatprep.mubr.msk.f32.mxu1 %vm562_vm2, %v335_v53  ;;  %v291_v55 = vpop.permute.xlu0 %290 }
  0xa3   : > { %vm321_vm11 = vcmp.eq.s32.totalorder %v291_v55, %v1390_v37  ;;  %vm322_vm12 = vcmp.eq.s32.totalorder %v294_v54, %v1390_v37 }
  0xa4   : > { %v337_v57 = vsel %vm321_vm11, 1.0, %v1242_v40  ;;  %v338_v60 = vsel %vm322_vm12, 1.0, %v1242_v40 }
  0xa5   : > { %1090 = vmatmul.mubr.msk.f32.gmra.mxu1 %vm562_vm2, %v336_v56 }
  0xa6   : > { %v300_v58 = vpop.permute.xlu1 %299  ;;  %1092 = vmatprep.mubr.msk.f32.mxu1 %vm562_vm2, %v337_v57  ;;  %v297_v59 = vpop.permute.xlu0 %296 }
  0xa7   : > { %vm323_vm13 = vcmp.eq.s32.totalorder %v297_v59, %v1390_v37  ;;  %vm324_vm14 = vcmp.eq.s32.totalorder %v300_v58, %v1390_v37 }
  0xa8   : > { %v339_v61 = vsel %vm323_vm13, 1.0, %v1242_v40  ;;  %v340_v0 = vsel %vm324_vm14, 1.0, %v1242_v40 }
  0xa9   : > { %1093 = vmatmul.mubr.msk.f32.gmra.mxu1 %vm562_vm2, %v338_v60 }
  0xaa   : > { %v306_v62 = vpop.permute.xlu1 %305  ;;  %1095 = vmatprep.mubr.msk.f32.mxu1 %vm562_vm2, %v339_v61  ;;  %v303_v63 = vpop.permute.xlu0 %302 }
  0xab   : > { %vm325_vm15 = vcmp.eq.s32.totalorder %v303_v63, %v1390_v37  ;;  %vm326_vm0 = vcmp.eq.s32.totalorder %v306_v62, %v1390_v37 }
  0xac   : > { %v341_v1 = vsel %vm325_vm15, 1.0, %v1242_v40  ;;  %v342_v4 = vsel %vm326_vm0, 1.0, %v1242_v40 }
  0xad   : > { %1096 = vmatmul.mubr.msk.f32.gmra.mxu1 %vm562_vm2, %v340_v0 }
  0xae   : > { %v312_v2 = vpop.permute.xlu1 %311  ;;  %1098 = vmatprep.mubr.msk.f32.mxu1 %vm562_vm2, %v341_v1  ;;  %v309_v3 = vpop.permute.xlu0 %308 }
  0xaf   : > { %vm327_vm1 = vcmp.eq.s32.totalorder %v309_v3, %v1390_v37  ;;  %vm328_vm3 = vcmp.eq.s32.totalorder %v312_v2, %v1390_v37 }
  0xb0   : > { %v343_v5 = vsel %vm327_vm1, 1.0, %v1242_v40  ;;  %v344_v6 = vsel %vm328_vm3, 1.0, %v1242_v40 }
  0xb1   : > { %1099 = vmatmul.mubr.msk.f32.gmra.mxu1 %vm562_vm2, %v342_v4 }
  0xb2   : > { %1101 = vmatprep.mubr.msk.f32.mxu1 %vm562_vm2, %v343_v5 }
  0xb5   : > { %1102 = vmatmul.mubr.msk.f32.gmra.mxu1 %vm562_vm2, %v344_v6  ;;  %vm867_vm2 = vcmask 1041409  }
  0xda   : > { %v1054_v7 = vpop.f32.mrf.mxu0 }
  0xdc   : > { %v483_v8 = vpop.f32.mrf.mxu0 }
  0xde   : > { %v1057_v9 = vpop.f32.mrf.mxu0 }
  0xe0   : > { %v493_v10 = vpop.f32.mrf.mxu0 }
  0xe2   : > { %v1060_v11 = vpop.f32.mrf.mxu0 }
  0xe4   : > { %v503_v12 = vpop.f32.mrf.mxu0 }
  0xe6   : > { %v1063_v13 = vpop.f32.mrf.mxu0 }
  0xe8   : > { %v513_v14 = vpop.f32.mrf.mxu0 }
  0xea   : > { %v1066_v18 = vpop.f32.mrf.mxu0 }
  0xec   : > { %v523_v25 = vpop.f32.mrf.mxu0 }
  0xee   : > { %v1069_v34 = vpop.f32.mrf.mxu0 }
  0xf0   : > { %v533_v42 = vpop.f32.mrf.mxu0 }
  0xf2   : > { %v1072_v49 = vpop.f32.mrf.mxu0 }
  0xf4   : > { %v543_v56 = vpop.f32.mrf.mxu0 }
  0xf6   : > { %v1075_v1 = vpop.f32.mrf.mxu0 }
 0x159   : > { %v1082_v15 = vpop.f32.mrf.mxu1 }
 0x15a   : > { %v683_v26 = vadd.f32 %v1082_v15, %v1054_v7 }
 0x15b   : > { %v677_v16 = vpop.f32.mrf.mxu1 }
 0x15c   : > { %v678_v17 = vadd.f32 %v677_v16, %v483_v8  ;;  %v764_v35 = vadd.f32 %v1427_v21, %v683_v26 }
 0x15d   : > { %v1085_v19 = vpop.f32.mrf.mxu1 }
 0x15e   : > { %v693_v20 = vadd.f32 %v1085_v19, %v1057_v9  ;;  %v763_v23 = vadd.f32 %v1427_v21, %v678_v17 }
 0x15f   : > { %v687_v22 = vpop.f32.mrf.mxu1 }
 0x160   : > { %v688_v24 = vadd.f32 %v687_v22, %v493_v10  ;;  %v766_v28 = vadd.f32 %v1427_v21, %v693_v20  ;;  %1147 = vtanh.f32 %v763_v23 }
 0x161   : > { %v1088_v27 = vpop.f32.mrf.mxu1 }
 0x162   : > { %v765_v29 = vadd.f32 %v1427_v21, %v688_v24  ;;  %v703_v30 = vadd.f32 %v1088_v27, %v1060_v11 }
 0x163   : > { %v697_v31 = vpop.f32.mrf.mxu1 }
 0x164   : > { %v768_v32 = vadd.f32 %v1427_v21, %v703_v30  ;;  %v698_v33 = vadd.f32 %v697_v31, %v503_v12  ;;  %1149 = vtanh.f32 %v765_v29 }
 0x165   : > { %v1091_v36 = vpop.f32.mrf.mxu1  ;;  %1151 = vtanh.f32 %v766_v28 }
 0x166   : > { %v767_v37 = vadd.f32 %v1427_v21, %v698_v33  ;;  %v713_v38 = vadd.f32 %v1091_v36, %v1063_v13  ;;  %1153 = vtanh.f32 %v768_v32 }
 0x167   : > { %v707_v39 = vpop.f32.mrf.mxu1 }
 0x168   : > { %1155 = vtanh.f32 %v767_v37  ;;  %v770_v40 = vadd.f32 %v1427_v21, %v713_v38  ;;  %v708_v41 = vadd.f32 %v707_v39, %v513_v14  ;;  %v553_v14 = vpop.f32.mrf.mxu0 }
 0x169   : > { %1157 = vtanh.f32 %v764_v35  ;;  %v1094_v43 = vpop.f32.mrf.mxu1 }
 0x16a   : > { %v769_v44 = vadd.f32 %v1427_v21, %v708_v41  ;;  %v723_v45 = vadd.f32 %v1094_v43, %v1066_v18  ;;  %1159 = vtanh.f32 %v770_v40 }
 0x16b   : > { %v717_v46 = vpop.f32.mrf.mxu1 }
 0x16c   : > { %1161 = vtanh.f32 %v769_v44  ;;  %v772_v47 = vadd.f32 %v1427_v21, %v723_v45  ;;  %v718_v48 = vadd.f32 %v717_v46, %v523_v25 }
 0x16d   : > { %v1097_v50 = vpop.f32.mrf.mxu1  ;;  %v1148_v57 = vpop.eup %1147 }
 0x16e   : > { %v771_v51 = vadd.f32 %v1427_v21, %v718_v48  ;;  %v733_v52 = vadd.f32 %v1097_v50, %v1069_v34  ;;  %1163 = vtanh.f32 %v772_v47 }
 0x16f   : > { %v727_v53 = vpop.f32.mrf.mxu1 }
 0x170   : > { %1165 = vtanh.f32 %v771_v51  ;;  %v774_v54 = vadd.f32 %v1427_v21, %v733_v52  ;;  %v728_v55 = vadd.f32 %v727_v53, %v533_v42 }
 0x171   : > { %v1100_v58 = vpop.f32.mrf.mxu1  ;;  %v1150_v59 = vpop.eup %1149 }
 0x172   : > { %v773_v60 = vadd.f32 %v1427_v21, %v728_v55  ;;  %v1152_v61 = vpop.eup %1151  ;;  %1167 = vtanh.f32 %v774_v54  ;;  %v743_v62 = vadd.f32 %v1100_v58, %v1072_v49 }
 0x173   : > { %v737_v63 = vpop.f32.mrf.mxu1  ;;  %v1154_v0 = vpop.eup %1153  ;;  %v802_v4 = vadd.f32 %v1152_v61, %v1150_v59 }
 0x174   : > { %1169 = vtanh.f32 %v773_v60  ;;  %v738_v2 = vadd.f32 %v737_v63, %v543_v56  ;;  %v776_v5 = vadd.f32 %v1427_v21, %v743_v62 }
 0x175   : > { %v1156_v3 = vpop.eup %1155  ;;  %v1103_v6 = vpop.f32.mrf.mxu1  ;;  %v803_v16 = vrot.slane %v802_v4, 4 }
 0x176   : > { %v1158_v7 = vpop.eup %1157  ;;  %v809_v8 = vadd.f32 %v1156_v3, %v1154_v0  ;;  %v775_v9 = vadd.f32 %v1427_v21, %v738_v2  ;;  %1171 = vtanh.f32 %v776_v5  ;;  %v753_v11 = vadd.f32 %v1103_v6, %v1075_v1 }
 0x177   : > { %v795_v10 = vadd.f32 %v1158_v7, %v1148_v57  ;;  %v747_v12 = vpop.f32.mrf.mxu1  ;;  %v1160_v13 = vpop.eup %1159  ;;  %v804_v27 = vadd.f32 %v803_v16, %v802_v4 }
 0x178   : > { %1173 = vtanh.f32 %v775_v9  ;;  %v778_v17 = vadd.f32 %v1427_v21, %v753_v11  ;;  %v748_v18 = vadd.f32 %v747_v12, %v553_v14  ;;  %v810_v19 = vrot.slane %v809_v8, 4 }
 0x179   : > { %v1162_v15 = vpop.eup %1161  ;;  %v796_v22 = vrot.slane %v795_v10, 4  ;;  %v805_v35 = vrot.slane %v804_v27, 2 }
 0x17a   : > { %v816_v20 = vadd.f32 %v1162_v15, %v1160_v13  ;;  %v777_v23 = vadd.f32 %v1427_v21, %v748_v18  ;;  %1175 = vtanh.f32 %v778_v17  ;;  %v811_v28 = vadd.f32 %v810_v19, %v809_v8 }
 0x17b   : > { %v1164_v24 = vpop.eup %1163  ;;  %v797_v30 = vadd.f32 %v796_v22, %v795_v10  ;;  %v806_v44 = vadd.f32 %v805_v35, %v804_v27 }
 0x17c   : > { %v817_v25 = vrot.slane %v816_v20, 4  ;;  %1177 = vtanh.f32 %v777_v23  ;;  %v812_v36 = vrot.slane %v811_v28, 2 }
 0x17d   : > { %v1166_v26 = vpop.eup %1165  ;;  %v798_v39 = vrot.slane %v797_v30, 2  ;;  %v807_v54 = vrot.slane %v806_v44, 1 }
 0x17e   : > { %v823_v29 = vadd.f32 %v1166_v26, %v1164_v24  ;;  %v818_v31 = vadd.f32 %v817_v25, %v816_v20  ;;  %v813_v45 = vadd.f32 %v812_v36, %v811_v28 }
 0x17f   : > { %v1168_v32 = vpop.eup %1167  ;;  %v799_v48 = vadd.f32 %v798_v39, %v797_v30  ;;  %v808_v0 = vadd.f32 %v807_v54, %v806_v44 }
 0x180   : > { %v824_v33 = vrot.slane %v823_v29, 4  ;;  %v819_v40 = vrot.slane %v818_v31, 2  ;;  %v814_v56 = vrot.slane %v813_v45, 1 }
 0x181   : > { %v1170_v34 = vpop.eup %1169  ;;  %v800_v59 = vrot.slane %v799_v48, 1  ;;  %v852_v12 = vmul.f32 0.0625, %v808_v0 }
 0x182   : > { %v825_v37 = vadd.f32 %v824_v33, %v823_v29  ;;  %v830_v38 = vadd.f32 %v1170_v34, %v1168_v32  ;;  %v820_v49 = vadd.f32 %v819_v40, %v818_v31  ;;  %v815_v3 = vadd.f32 %v814_v56, %v813_v45 }
 0x183   : > { %v1172_v21 = vpop.eup %1171  ;;  %v801_v5 = vadd.f32 %v800_v59, %v799_v48 }
 0x184   : > { %v831_v41 = vrot.slane %v830_v38, 4  ;;  %v826_v42 = vrot.slane %v825_v37, 2  ;;  %v821_v60 = vrot.slane %v820_v49, 1  ;;  %v853_v14 = vmul.f32 0.0625, %v815_v3 }
 0x185   : > { %v1174_v43 = vpop.eup %1173  ;;  %v851_v16 = vmul.f32 0.0625, %v801_v5 }
 0x186   : > { %v837_v46 = vadd.f32 %v1174_v43, %v1172_v21  ;;  %v832_v47 = vadd.f32 %v831_v41, %v830_v38  ;;  %v827_v50 = vadd.f32 %v826_v42, %v825_v37  ;;  %v822_v6 = vadd.f32 %v821_v60, %v820_v49 }
 0x187   : > { %v1176_v53 = vpop.eup %1175  ;;  %v868_v22 = vsel %vm867_vm2, %v852_v12, %v851_v16 }
 0x188   : > { %v833_v51 = vrot.slane %v832_v47, 2  ;;  %v838_v52 = vrot.slane %v837_v46, 4  ;;  %v828_v62 = vrot.slane %v827_v50, 1  ;;  %v854_v17 = vmul.f32 0.0625, %v822_v6 }
 0x189   : > { %v1178_v55 = vpop.eup %1177  ;;  %v870_v24 = vsel %vm869_vm4, %v853_v14, %v868_v22 }
 0x18a   : > { %v834_v57 = vadd.f32 %v833_v51, %v832_v47  ;;  %v839_v58 = vadd.f32 %v838_v52, %v837_v46  ;;  %v844_v61 = vadd.f32 %v1178_v55, %v1176_v53  ;;  %v829_v8 = vadd.f32 %v828_v62, %v827_v50 }
 0x18b   : > { %v872_v26 = vsel %vm871_vm5, %v854_v17, %v870_v24 }
 0x18c   : > { %v840_v63 = vrot.slane %v839_v58, 2  ;;  %v835_v1 = vrot.slane %v834_v57, 1  ;;  %v845_v2 = vrot.slane %v844_v61, 4  ;;  %v855_v18 = vmul.f32 0.0625, %v829_v8 }
 0x18e   : > { %v841_v4 = vadd.f32 %v840_v63, %v839_v58  ;;  %v846_v7 = vadd.f32 %v845_v2, %v844_v61  ;;  %v836_v10 = vadd.f32 %v835_v1, %v834_v57  ;;  %v874_v27 = vsel %vm873_vm6, %v855_v18, %v872_v26 }
 0x190   : > { %v842_v9 = vrot.slane %v841_v4, 1  ;;  %v847_v11 = vrot.slane %v846_v7, 2  ;;  %v856_v20 = vmul.f32 0.0625, %v836_v10 }
 0x192   : > { %v843_v13 = vadd.f32 %v842_v9, %v841_v4  ;;  %v848_v15 = vadd.f32 %v847_v11, %v846_v7  ;;  %v876_v29 = vsel %vm875_vm7, %v856_v20, %v874_v27 }
 0x194   : > { %v849_v19 = vrot.slane %v848_v15, 1  ;;  %v857_v23 = vmul.f32 0.0625, %v843_v13 }
 0x196   : > { %v850_v25 = vadd.f32 %v849_v19, %v848_v15  ;;  %v878_v30 = vsel %vm877_vm8, %v857_v23, %v876_v29 }
 0x198   : > { %v858_v28 = vmul.f32 0.0625, %v850_v25 }
 0x19a   : > { %v880_v31 = vsel %vm879_vm9, %v858_v28, %v878_v30 }
 0x19b   : > { %882 = vst [vmem:[%s234_s8] sm:$0xff] %v880_v31 }
 0x19c   : > { %1192 = shalt.err (!%p1189_p3)
}
 0x19d   : > { %s1193_s17 = scalar_lea.hbm %s1455_s12, 128  ;;  %s1197_s26 = scalar_lea.hbm %s1497_s5, 256 }
 0x19e   : > { %p1194_p4 = scmp.ne.s32.totalorder %s1455_s12, %s1193_s17  ;;  %p1198_p9 = scmp.lt.s32.totalorder %s1455_s12, %s1497_s5 }
 0x19f   : > { %p1199_p10 = scmp.lt.s32.totalorder %s1197_s26, %s1193_s17 }
 0x1a0   : > { %p1195_p7 = pnand %p1194_p4, %p1312_p5 }
 0x1a1   : > { %p1200_p11 = por %p1199_p10, %p1198_p9 }
 0x1a2   : > { %p1196_p8 = pneg %p1195_p7 }
 0x1a4   : > { %p1201_p12 = pnand %p1200_p11, %p1196_p8 }
 0x1a6   : > { %1204 = shalt.err (!%p1201_p12)
}
 0x1a7   : > { %1104 = dma.vmem_to_hbm [thread:$0]  (%p1312_p5), %s898_s9, 128, %s1455_s12, %s884_s13  }
 0x1a8 PF: > { %p1110_p13 = scmp.ge.s32.totalorder %s1239_s21, 2  ;;  %s909_s7 = sand.u32 1, %s1227_s18  }
 0x1a9   : > { %s910_s8 = scalar_lea.sflag [#allocation3], %s909_s7 }
 0x1aa   : > { %p1107_p0 = pnand %p1110_p13, %p1316_p6 }
 0x1ac   : > { %p1108_p1 = pneg %p1107_p0 }
 0x1ae   : > { %1222 = dma.done.wait (%p1108_p1), %s910_s8, 128  }
 0x1af   : > { %1224 = vsyncadd (%p1108_p1), %s910_s8, 4294967168  ;;  %p15_p2 = scmp.ge.s32.totalorder %s1299_s24, 4   ;;  %s1500_s18 = smov %s1231_s19 }
 0x1b0   : > { %s1501_s19 = smov %s1235_s20  ;;  %s1502_s20 = smov %s1310_s27 }
 0x1b1   : > { %s1503_s21 = smov %s1299_s24  ;;  %17 = sbr.rel (!%p15_p2) target bundleno = 3 (0x3), region = 78 }
 0x1b6   :  { %915 = vsyncpa [#allocation3], 1 }
 0x1b7   :  { %917 = vsyncpa [#allocation3 + $0x1], 1 }

</bundles_post_ra>
